<compile_context>
chip_gen: v5e
topology: v5e:2x2
jax: 0.10.0
libtpu: 0.0.40
codegen_flags: <defaults>
</compile_context>

<pallas_src>
import functools

import jax
import jax.numpy as jnp
from jax.experimental import pallas as pl
from jax.experimental.pallas import tpu as pltpu


IN_PAD = 128            # contraction dim padded to one lane extent (MXU-aligned)
OUT_PAD = 128           # output lane dim padded to one lane extent
MAX_GRIDLESS_ROWS = 1024  # single-tile (gridless) path only; see TODO above


def nest_mlp_kernel(x_ref, w_ref, b_ref, o_ref, x_pad_ref):
    # x_ref:     (B, in_f)         logical activation, full array in VMEM
    # w_ref:     (IN_PAD, OUT_PAD) pre-transposed, zero-padded weight
    # b_ref:     (1, OUT_PAD)      zero-padded bias
    # o_ref:     (B, out_f)        logical output, full array in VMEM
    # x_pad_ref: (B_PAD, IN_PAD)   VMEM scratch: MXU-aligned LHS operand
    B, in_f = x_ref.shape
    out_f = o_ref.shape[-1]

    # Fold the activation padding into the kernel: zero the aligned scratch
    # tile, then masked-store x into its top-left corner.
    x_pad_ref[...] = jnp.zeros_like(x_pad_ref)
    x_pad_ref[0:B, 0:in_f] = x_ref[...]

    # Single MXU tile, f32 accumulation. Padded rows/cols are zero so they
    # contribute nothing to the result.  (Precision can be pinned explicitly
    # if bit-exact f32 parity is ever required across generations.)
    y = jnp.dot(x_pad_ref[...], w_ref[...], preferred_element_type=jnp.float32)

    # f32 epilogue (bias add + ReLU) — keep f32 on the VPU path (v5e-safe).
    y = jnp.maximum(y + b_ref[...], 0.0)

    # Store only the logical (B, out_f) window: the output "slice" lives
    # inside the kernel instead of being a separate dispatched XLA copy.
    o_ref[...] = y[0:B, 0:out_f].astype(o_ref.dtype)


def prepare_params(weight, bias):
    """One-time parameter layout fold: transpose + zero-pad.

    weight: (OUT, IN) PyTorch layout -> (IN_PAD, OUT_PAD) for x @ w.
    bias:   (OUT,)                   -> (1, OUT_PAD).
    Padded rows/cols are zero, so they contribute nothing to the matmul and
    ReLU(0) = 0 keeps the padded output columns zero.
    """
    out_f, in_f = weight.shape
    assert in_f <= IN_PAD and out_f <= OUT_PAD, (
        "single-tile kernel requires in_features <= 128 and out_features <= 128"
    )
    w_pad = (
        jnp.zeros((IN_PAD, OUT_PAD), jnp.float32)
        .at[:in_f, :out_f]
        .set(weight.T.astype(jnp.float32))
    )
    b_pad = (
        jnp.zeros((1, OUT_PAD), jnp.float32)
        .at[:, :out_f]
        .set(bias.astype(jnp.float32))
    )
    return w_pad, b_pad


@functools.partial(jax.jit, static_argnames=("out_features",))
def nest_mlp_forward(x, w_pad, b_pad, *, out_features=30):
    """x: (B, in_f) f32; w_pad: (128, 128) f32; b_pad: (1, 128) f32 -> (B, out_features) f32."""
    B, in_f = x.shape
    assert in_f <= IN_PAD, "in_features must be <= 128 for the single-tile kernel"
    assert out_features <= OUT_PAD, "out_features must be <= 128 for the single-tile kernel"
    assert B <= MAX_GRIDLESS_ROWS, "add a batch grid for very large batches"

    # Adaptive sublane padding: whole (8, 128) tiles for the scratch LHS.
    b_pad_rows = 8 * pl.cdiv(B, 8)

    cost = pl.CostEstimate(
        flops=2 * B * in_f * out_features,
        transcendentals=0,
        bytes_accessed=4 * (x.size + w_pad.size + b_pad.size + B * out_features),
    )

    return pl.pallas_call(
        nest_mlp_kernel,
        out_shape=jax.ShapeDtypeStruct((B, out_features), jnp.float32),
        # Gridless: single invocation, whole (tiny) arrays resident in VMEM —
        # no software-pipeline / double-buffer bookkeeping for a one-vreg
        # sized problem (~72 KiB total, far below any VMEM limit).
        in_specs=[
            pl.BlockSpec(memory_space=pltpu.MemorySpace.VMEM),
            pl.BlockSpec(memory_space=pltpu.MemorySpace.VMEM),
            pl.BlockSpec(memory_space=pltpu.MemorySpace.VMEM),
        ],
        out_specs=pl.BlockSpec(memory_space=pltpu.MemorySpace.VMEM),
        scratch_shapes=[pltpu.VMEM((b_pad_rows, IN_PAD), jnp.float32)],
        cost_estimate=cost,
    )(x, w_pad, b_pad)


if __name__ == "__main__":
    key = jax.random.PRNGKey(0)
    k_x, k_w, k_b = jax.random.split(key, 3)

    B, IN, OUT = 2, 40, 30

    # Input matches `X = torch.rand(2, 40)` (uniform [0, 1)).
    x = jax.random.uniform(k_x, (B, IN), dtype=jnp.float32)

    # Deterministic PyTorch-style init: U(-1/sqrt(in), 1/sqrt(in)).
    bound = 1.0 / jnp.sqrt(jnp.float32(IN))
    weight = jax.random.uniform(
        k_w, (OUT, IN), minval=-bound, maxval=bound, dtype=jnp.float32
    )
    bias = jax.random.uniform(
        k_b, (OUT,), minval=-bound, maxval=bound, dtype=jnp.float32
    )

    # One-time layout fold of the parameters (not on the per-call path).
    w_pad, b_pad = prepare_params(weight, bias)

    out = nest_mlp_forward(x, w_pad, b_pad, out_features=OUT)
    out = jax.block_until_ready(out)

    # Sanity check against plain-JAX reference.
    ref = jnp.maximum(x @ weight.T + bias, 0.0)
    assert out.shape == (B, OUT)
    assert jnp.allclose(out, ref, atol=1e-5, rtol=1e-5)

    print("KERNEL_OK")
</pallas_src>

<mosaic_0001>
module attributes {stable_mosaic.version = 11 : i64} {
  func.func @nest_mlp_kernel(%arg0: memref<2x40xf32, #tpu.memory_space<vmem>>, %arg1: memref<128x128xf32, #tpu.memory_space<vmem>>, %arg2: memref<1x128xf32, #tpu.memory_space<vmem>>, %arg3: memref<2x30xf32, #tpu.memory_space<vmem>>, %arg4: memref<8x128xf32, #tpu.memory_space<vmem>>) attributes {dimension_semantics = [], scalar_prefetch = 0 : i64, scratch_operands = 1 : i64, tpu.core_type = #tpu.core_type<tc>} {
    %cst = arith.constant 0.000000e+00 : f32
    %0 = vector.broadcast %cst : f32 to vector<8x128xf32>
    %c0 = arith.constant 0 : index
    %c0_0 = arith.constant 0 : index
    %1 = vector.load %arg4[%c0, %c0_0] : memref<8x128xf32, #tpu.memory_space<vmem>>, vector<8x128xf32>
    tpu.vector_store %arg4[%c0, %c0_0], %0 {strides = array<i32>} : memref<8x128xf32, #tpu.memory_space<vmem>>, vector<8x128xf32>,
    %c0_1 = arith.constant 0 : index
    %c0_2 = arith.constant 0 : index
    %2 = vector.load %arg0[%c0_1, %c0_2] : memref<2x40xf32, #tpu.memory_space<vmem>>, vector<2x40xf32>
    %c0_3 = arith.constant 0 : index
    %c0_4 = arith.constant 0 : index
    %3 = vector.load %arg4[%c0_3, %c0_4] : memref<8x128xf32, #tpu.memory_space<vmem>>, vector<2x40xf32>
    tpu.vector_store %arg4[%c0_3, %c0_4], %2 {strides = array<i32>} : memref<8x128xf32, #tpu.memory_space<vmem>>, vector<2x40xf32>,
    %c0_5 = arith.constant 0 : index
    %c0_6 = arith.constant 0 : index
    %4 = vector.load %arg4[%c0_5, %c0_6] : memref<8x128xf32, #tpu.memory_space<vmem>>, vector<8x128xf32>
    %c0_7 = arith.constant 0 : index
    %c0_8 = arith.constant 0 : index
    %5 = vector.load %arg1[%c0_7, %c0_8] : memref<128x128xf32, #tpu.memory_space<vmem>>, vector<128x128xf32>
    %cst_9 = arith.constant dense<0.000000e+00> : vector<8x128xf32>
    %6 = tpu.matmul %4, %5, %cst_9 {dimension_numbers = #tpu.dot_dimension_numbers<[1], [0], [0], [1], [0, 0, 1, 1], [], []>} : vector<8x128xf32>, vector<128x128xf32>, vector<8x128xf32> -> vector<8x128xf32>
    %c0_10 = arith.constant 0 : index
    %c0_11 = arith.constant 0 : index
    %7 = vector.load %arg2[%c0_10, %c0_11] : memref<1x128xf32, #tpu.memory_space<vmem>>, vector<1x128xf32>
    %8 = vector.broadcast %7 : vector<1x128xf32> to vector<8x128xf32>
    %9 = arith.addf %6, %8 : vector<8x128xf32>
    %cst_12 = arith.constant 0.000000e+00 : f32
    %10 = vector.broadcast %cst_12 : f32 to vector<8x128xf32>
    %11 = arith.maximumf %9, %10 : vector<8x128xf32>
    %12 = vector.extract_strided_slice %11 {offsets = [0, 0], sizes = [2, 30], strides = [1, 1]} : vector<8x128xf32> to vector<2x30xf32>
    %c0_13 = arith.constant 0 : index
    %c0_14 = arith.constant 0 : index
    %13 = vector.load %arg3[%c0_13, %c0_14] : memref<2x30xf32, #tpu.memory_space<vmem>>, vector<2x30xf32>
    tpu.vector_store %arg3[%c0_13, %c0_14], %12 {strides = array<i32>} : memref<2x30xf32, #tpu.memory_space<vmem>>, vector<2x30xf32>,
    return
  }
}

</mosaic_0001>

<bundles_post_ra>
// kernel: nest_mlp_forward.1
= control target key start
LH: loop header
LB: loop body
LE: loop exit
PB: predicated region body
PF: predicated region fallthrough
CT: control target
= control target key end

     0   :  { %8 = vsyncpa [#allocation4], 0  ;;  %s234_s0 = inlined_call_operand.hbm [shape: f32[2,40], index: 0, kind: input, shape index: {}]   ;;  %s235_s1 = inlined_call_operand.hbm [shape: f32[128,128], index: 1, kind: input, shape index: {}]   ;;  %s236_s2 = inlined_call_operand.vmem [shape: f32[1,128], index: 2, kind: input, shape index: {}]   ;;  %s237_s3 = inlined_call_operand.hbm [shape: f32[2,30], index: 3, kind: output, shape index: {}]  }
   0x1   :  { %9 = vsyncpa [#allocation7], 0 }
   0x2   :  { %10 = vsyncpa [#allocation5], 0  ;;  %s16_s14 = sshll.u32 %s234_s0, 4  ;;  %s196_s15 = smov [#allocation3]   ;;  %s17_s14 = int_to_ptr.hbm [resolvable:$true] %s16_s14 }
   0x3   :  { %s18_s16 = sshll.u32 %s196_s15, 4  ;;  %s26_s19 = sshll.u32 %s235_s1, 4  ;;  %s19_s16 = int_to_ptr.vmem [resolvable:$true] %s18_s16  ;;  %s27_s19 = int_to_ptr.hbm [resolvable:$true] %s26_s19 }
   0x4   :  { %21 = dma.hbm_to_vmem [thread:$0]  %s17_s14, 32, %s19_s16, [#allocation4]  }
   0x5   :  { %s197_s20 = smov [#allocation6]   ;;  %s198_s22 = smov 128  }
   0x6   :  { %s28_s21 = sshll.u32 %s197_s20, 4  ;;  %s199_s23 = smov 8   ;;  %s29_s21 = int_to_ptr.vmem [resolvable:$true] %s28_s21 }
   0x7   :  { %34 = dma.hbm_to_vmem [thread:$0]  %s27_s19, 2048, %s29_s21, [#allocation7], %s198_s22, %s198_s22, %s199_s23  }
   0x8   :  { %190 = dma.done.wait [#allocation4], 32  }
   0x9   :  { %191 = vsyncadd [#allocation4], 4294967264 }
   0xa   :  { %192 = dma.done.wait [#allocation7], 2048  }
   0xb   :  { %193 = vsyncadd [#allocation7], 4294965248  ;;  %v200_v0 = vmov 0.0   ;;  %v65_v1 = vld [vmem:[#allocation6 + $0x78] sm:$0xff]  ;;  %v64_v2 = vld [vmem:[#allocation6 + $0x70] sm:$0xff]  ;;  %vm47_vm0 = vcmask 320512  }
   0xc   :  { %45 = vst [vmem:[#allocation2] sm:$0xff] %v200_v0  ;;  %70 = vmatpush.msra.mxu0 %v65_v1  ;;  %v63_v3 = vld [vmem:[#allocation6 + $0x68] sm:$0xff]  ;;  %v62_v4 = vld [vmem:[#allocation6 + $0x60] sm:$0xff]  ;;  %v46_v5 = vld [vmem:[#allocation3] sm:$0x3]  ;;  %s201_s24 = smov [#allocation8]  }
   0xd   :  { %v61_v6 = vld [vmem:[#allocation6 + $0x58] sm:$0xff]  ;;  %48 = vst.msk [vmem:[#allocation2] sm:$0x3] %vm47_vm0, %v46_v5  ;;  %v60_v7 = vld [vmem:[#allocation6 + $0x50] sm:$0xff]  ;;  %v59_v8 = vld [vmem:[#allocation6 + $0x48] sm:$0xff]  ;;  %s98_s25 = sshll.u32 %s201_s24, 4  ;;  %s99_s25 = int_to_ptr.vmem [resolvable:$true] %s98_s25 }
   0xe   :  { %71 = vmatpush.msra.mxu0 %v64_v2  ;;  %v58_v9 = vld [vmem:[#allocation6 + $0x40] sm:$0xff]  ;;  %v57_v10 = vld [vmem:[#allocation6 + $0x38] sm:$0xff]  ;;  %v56_v11 = vld [vmem:[#allocation6 + $0x30] sm:$0xff]  ;;  %s100_s28 = sshll.u32 %s237_s3, 4  ;;  %vm91_vm1 = vcmask 238592   ;;  %s101_s28 = int_to_ptr.hbm [resolvable:$true] %s100_s28 }
   0xf   :  { %v55_v12 = vld [vmem:[#allocation6 + $0x28] sm:$0xff]  ;;  %v54_v13 = vld [vmem:[#allocation6 + $0x20] sm:$0xff]  ;;  %v53_v14 = vld [vmem:[#allocation6 + $0x18] sm:$0xff] }
  0x10   :  { %72 = vmatpush.msra.mxu0 %v63_v3  ;;  %v52_v15 = vld [vmem:[#allocation6 + $0x10] sm:$0xff]  ;;  %v51_v16 = vld [vmem:[#allocation6 + $0x8] sm:$0xff]  ;;  %v50_v17 = vld [vmem:[#allocation6] sm:$0xff] }
  0x11   :  { %v117_v19 = vld [vmem:[%s236_s2] ss:$0 sm:$0xff] }
  0x12   :  { %73 = vmatpush.msra.mxu0 %v62_v4 }
  0x14   :  { %74 = vmatpush.msra.mxu0 %v61_v6  ;;  %v49_v18 = vld [vmem:[#allocation2] sm:$0xff] }
  0x16   :  { %75 = vmatpush.msra.mxu0 %v60_v7 }
  0x18   :  { %76 = vmatpush.msra.mxu0 %v59_v8 }
  0x1a   :  { %77 = vmatpush.msra.mxu0 %v58_v9 }
  0x1c   :  { %78 = vmatpush.msra.mxu0 %v57_v10 }
  0x1e   :  { %79 = vmatpush.msra.mxu0 %v56_v11 }
  0x20   :  { %80 = vmatpush.msra.mxu0 %v55_v12 }
  0x22   :  { %81 = vmatpush.msra.mxu0 %v54_v13 }
  0x24   :  { %82 = vmatpush.msra.mxu0 %v53_v14 }
  0x26   :  { %83 = vmatpush.msra.mxu0 %v52_v15 }
  0x28   :  { %84 = vmatpush.msra.mxu0 %v51_v16 }
  0x2a   :  { %85 = vmatpush.msra.mxu0 %v50_v17 }
  0x2b   :  { %86 = vmatmul.f32.vlgmr.msra.gmra.mxu0 %v49_v18 }
  0xa8   :  { %v87_v20 = vpop.f32.mrf.mxu0 }
  0xa9   :  { %v88_v21 = vadd.f32 %v117_v19, %v87_v20 }
  0xab   :  { %v90_v22 = vmax.f32 %v88_v21, 0.0 }
  0xad   :  { %92 = vst.msk [vmem:[#allocation8] sm:$0x3] %vm91_vm1, %v90_v22 }
  0xae   :  { %103 = dma.vmem_to_hbm [thread:$0]  %s99_s25, 32, %s101_s28, [#allocation5]  }
  0xaf   :  { %194 = dma.done.wait [#allocation5], 32  }
  0xb0   :  { %195 = vsyncadd [#allocation5], 4294967264 }
  0xb1   :  { %108 = vsyncpa [#allocation4], 1 }
  0xb2   :  { %109 = vsyncpa [#allocation7], 1 }
  0xb3   :  { %110 = vsyncpa [#allocation5], 1 }

</bundles_post_ra>
